<compile_context>
chip_gen: v7x
topology: tpu7x:2x2x1
jax: 0.10.0
libtpu: 0.0.40
codegen_flags: <defaults>
</compile_context>

<pallas_src>
import functools

import jax
import jax.numpy as jnp
from jax.experimental import pallas as pl
from jax.experimental.pallas import tpu as pltpu

N_CLASSES = 23
N_PAD = 128  # lane-dense padded output width


def _round_up(x, m):
    return ((x + m - 1) // m) * m


def _masked_msa_kernel(x_ref, w_ref, b_ref, o_ref):
    # x_ref: (tm, c)      VMEM tile of flattened MSA embedding rows
    # w_ref: (c, N_PAD)   full (padded) weight, resident across the grid
    # b_ref: (1, N_PAD)   full (padded) bias (f32), resident across the grid
    # o_ref: (tm, N_PAD)  output tile
    acc = jnp.dot(x_ref[...], w_ref[...], preferred_element_type=jnp.float32)
    o_ref[...] = (acc + b_ref[...]).astype(o_ref.dtype)


def masked_msa_head(m, weight, bias, *, tm=1024, compute_dtype=None,
                    out_dtype=None, return_padded=False):
    """m: (B, s, i, c); weight: (23, c) (PyTorch layout); bias: (23,).

    Returns (B, s, i, 23) logits (or (B, s, i, 128) lane-padded if
    return_padded=True; lanes 23..127 are zero + bias-pad = 0).
    """
    B, s, i, c = m.shape
    M = B * s * i
    compute_dtype = jnp.dtype(compute_dtype) if compute_dtype is not None else m.dtype
    out_dtype = jnp.dtype(out_dtype) if out_dtype is not None else m.dtype

    # Pick the row tile: multiple of 8, no bigger than (8-rounded) M, and keep the
    # double-buffered VMEM footprint under ~24 MiB (safe for v5e/v6e/v7x scoped VMEM).
    tm = _round_up(min(tm, _round_up(M, 8)), 8)

    def footprint(t):
        in_b = 2 * t * c * compute_dtype.itemsize          # x tile, double-buffered
        out_b = 2 * t * N_PAD * out_dtype.itemsize          # out tile, double-buffered
        w_b = 2 * (c * N_PAD * compute_dtype.itemsize + N_PAD * 4)
        return in_b + out_b + w_b

    VMEM_BUDGET = 24 * 1024 * 1024
    while footprint(tm) > VMEM_BUDGET and tm > 256:
        tm = max(256, tm // 2)

    x = m.reshape(M, c).astype(compute_dtype)

    # Pad weight/bias along the class axis to 128 lanes (lane-dense stores).
    w_pad = (jnp.zeros((c, N_PAD), dtype=compute_dtype)
             .at[:, :N_CLASSES].set(weight.T.astype(compute_dtype)))
    b_pad = (jnp.zeros((1, N_PAD), dtype=jnp.float32)
             .at[:, :N_CLASSES].set(bias[None, :].astype(jnp.float32)))

    grid = (pl.cdiv(M, tm),)

    cost = pl.CostEstimate(
        flops=2 * M * c * N_PAD,
        transcendentals=0,
        bytes_accessed=(M * c * compute_dtype.itemsize
                        + M * N_PAD * out_dtype.itemsize
                        + c * N_PAD * compute_dtype.itemsize
                        + N_PAD * 4),
    )

    # Explicitly request scoped VMEM with headroom (unblocks larger tm), but stay
    # well under v7x's 64 MiB physical VMEM per TensorCore.
    vmem_limit = int(min(max(2 * footprint(tm), 16 * 1024 * 1024), 48 * 1024 * 1024))

    out_padded = pl.pallas_call(
        _masked_msa_kernel,
        out_shape=jax.ShapeDtypeStruct((M, N_PAD), out_dtype),
        grid_spec=pltpu.PrefetchScalarGridSpec(
            num_scalar_prefetch=0,
            grid=grid,
            in_specs=[
                pl.BlockSpec((tm, c), lambda r: (r, 0)),       # input rows tile
                pl.BlockSpec((c, N_PAD), lambda r: (0, 0)),    # full weight (resident)
                pl.BlockSpec((1, N_PAD), lambda r: (0, 0)),    # full bias (resident)
            ],
            out_specs=pl.BlockSpec((tm, N_PAD), lambda r: (r, 0)),
        ),
        compiler_params=pltpu.CompilerParams(
            dimension_semantics=("parallel",),   # row axis splits across v7x's 2 TCs
            vmem_limit_bytes=vmem_limit,
        ),
        cost_estimate=cost,
    )(x, w_pad, b_pad)

    if return_padded:
        return out_padded.reshape(B, s, i, N_PAD)
    # Keep the slice+reshape inside the caller's jit so XLA fuses it with the store.
    return out_padded[:, :N_CLASSES].reshape(B, s, i, N_CLASSES)


def _reference(m, weight, bias):
    return jnp.einsum("bsic,nc->bsin", m, weight) + bias


if __name__ == "__main__":
    key = jax.random.PRNGKey(0)
    B, s, i, c = 2, 8, 16, 32  # M = B*s*i = 256 rows (small demo shape)

    k_m, k_w, k_b = jax.random.split(key, 3)
    # Deterministic parameter init (PyTorch Linear default: U(-1/sqrt(c), 1/sqrt(c))).
    bound = 1.0 / (c ** 0.5)
    weight = jax.random.uniform(k_w, (N_CLASSES, c), jnp.float32, -bound, bound)
    bias = jax.random.uniform(k_b, (N_CLASSES,), jnp.float32, -bound, bound)
    m = jax.random.normal(k_m, (B, s, i, c), jnp.float32)

    # jit so the post-kernel 23-class slice/reshape fuses with surrounding XLA ops.
    head = jax.jit(functools.partial(masked_msa_head, tm=1024))
    out = jax.block_until_ready(head(m, weight, bias))

    ref = _reference(m, weight, bias)
    assert out.shape == (B, s, i, N_CLASSES)
    assert jnp.allclose(out, ref, atol=1e-5, rtol=1e-5), "mismatch vs reference"

    print("KERNEL_OK")
</pallas_src>

<mosaic_0001>
module attributes {stable_mosaic.version = 11 : i64} {
  func.func @_masked_msa_kernel(%arg0: i32, %arg1: memref<256x32xf32, #tpu.memory_space<vmem>>, %arg2: memref<32x128xf32, #tpu.memory_space<vmem>>, %arg3: memref<1x128xf32, #tpu.memory_space<vmem>>, %arg4: memref<256x128xf32, #tpu.memory_space<vmem>>) attributes {dimension_semantics = [#tpu.dimension_semantics<parallel>], iteration_bounds = array<i64: 1>, scalar_prefetch = 0 : i64, scratch_operands = 0 : i64, tpu.core_type = #tpu.core_type<tc>, window_params = [{transform_indices = @transform_0, window_bounds = array<i64: 256, 32>}, {pipeline_mode = #tpu.pipeline_mode<synchronous>, transform_indices = @transform_1, window_bounds = array<i64: 32, 128>}, {pipeline_mode = #tpu.pipeline_mode<synchronous>, transform_indices = @transform_2, window_bounds = array<i64: 1, 128>}, {transform_indices = @transform_3, window_bounds = array<i64: 256, 128>}]} {
    %c0 = arith.constant 0 : index
    %c0_0 = arith.constant 0 : index
    %0 = vector.load %arg1[%c0, %c0_0] : memref<256x32xf32, #tpu.memory_space<vmem>>, vector<256x32xf32>
    %c0_1 = arith.constant 0 : index
    %c0_2 = arith.constant 0 : index
    %1 = vector.load %arg2[%c0_1, %c0_2] : memref<32x128xf32, #tpu.memory_space<vmem>>, vector<32x128xf32>
    %cst = arith.constant dense<0.000000e+00> : vector<256x128xf32>
    %2 = tpu.matmul %0, %1, %cst {dimension_numbers = #tpu.dot_dimension_numbers<[1], [0], [0], [1], [0, 0, 1, 1], [], []>} : vector<256x32xf32>, vector<32x128xf32>, vector<256x128xf32> -> vector<256x128xf32>
    %c0_3 = arith.constant 0 : index
    %c0_4 = arith.constant 0 : index
    %3 = vector.load %arg3[%c0_3, %c0_4] : memref<1x128xf32, #tpu.memory_space<vmem>>, vector<1x128xf32>
    %4 = vector.broadcast %3 : vector<1x128xf32> to vector<256x128xf32>
    %5 = arith.addf %2, %4 : vector<256x128xf32>
    %c0_5 = arith.constant 0 : index
    %c0_6 = arith.constant 0 : index
    %6 = vector.load %arg4[%c0_5, %c0_6] : memref<256x128xf32, #tpu.memory_space<vmem>>, vector<256x128xf32>
    tpu.vector_store %arg4[%c0_5, %c0_6], %5 {strides = array<i32>} : memref<256x128xf32, #tpu.memory_space<vmem>>, vector<256x128xf32>,
    return
  }
  func.func @transform_0(%arg0: i32) -> (i32, i32) {
    %c0_i32 = arith.constant 0 : i32
    %c0_i32_0 = arith.constant 0 : i32
    return %arg0, %c0_i32 : i32, i32
  }
  func.func @transform_1(%arg0: i32) -> (i32, i32) {
    %c0_i32 = arith.constant 0 : i32
    %c0_i32_0 = arith.constant 0 : i32
    %c0_i32_1 = arith.constant 0 : i32
    return %c0_i32, %c0_i32_0 : i32, i32
  }
  func.func @transform_2(%arg0: i32) -> (i32, i32) {
    %c0_i32 = arith.constant 0 : i32
    %c0_i32_0 = arith.constant 0 : i32
    %c0_i32_1 = arith.constant 0 : i32
    return %c0_i32, %c0_i32_0 : i32, i32
  }
  func.func @transform_3(%arg0: i32) -> (i32, i32) {
    %c0_i32 = arith.constant 0 : i32
    %c0_i32_0 = arith.constant 0 : i32
    return %arg0, %c0_i32 : i32, i32
  }
}

</mosaic_0001>

<bundles_post_ra>
// kernel: masked_msa_head.1
= control target key start
LH: loop header
LB: loop body
LE: loop exit
PB: predicated region body
PF: predicated region fallthrough
CT: control target
= control target key end

     0   :  { %8 = vsyncpa [#allocation3], 0  ;;  %s767_s0 = inlined_call_operand.hbm [shape: f32[256,32], index: 0, kind: input, shape index: {}]   ;;  %s768_s1 = inlined_call_operand.vmem [shape: f32[32,128], index: 1, kind: input, shape index: {}]   ;;  %s769_s2 = inlined_call_operand.vmem [shape: f32[1,128], index: 2, kind: input, shape index: {}]   ;;  %s770_s3 = inlined_call_operand.hbm [shape: f32[256,128], index: 3, kind: output, shape index: {}]  }
   0x1   :  { %9 = vsyncpa [#allocation4], 0  ;;  %s632_s12 = smov [#allocation2]   ;;  %s584_s16 = scalar_lea.hbm %s767_s0, 4096 }
   0x2   :  { %s15_s13 = sshll.u32 %s632_s12, 4  ;;  %p585_p0 = scmp.ne.s32.totalorder %s767_s0, %s584_s16  ;;  %s16_s13 = int_to_ptr.vmem [resolvable:$true] %s15_s13 }
   0x3   :  { %p588_p1 = scmp.lt.u32.totalorder %s584_s16, %s767_s0 }
   0x5   :  { %p590_p2 = pnand %p588_p1, %p585_p0 }
   0x7   :  { %593 = shalt.err (!%p590_p2)
}
   0x8   :  { %s594_s21 = scalar_lea.vmem %s16_s13, 4096  ;;  %p599_p4 = scmp.lt.s32.totalorder %s16_s13, %s16_s13 }
   0x9   :  { %p595_p3 = scmp.ne.s32.totalorder %s16_s13, %s594_s21  ;;  %p600_p5 = scmp.lt.s32.totalorder %s594_s21, %s594_s21 }
   0xb   :  { %p601_p6 = por %p600_p5, %p599_p4 }
   0xd   :  { %p602_p7 = pnand %p601_p6, %p595_p3 }
   0xf   :  { %605 = shalt.err (!%p602_p7)
}
  0x10   :  { %s633_s22 = smov 128   ;;  %s634_s23 = smov 8  }
  0x11   :  { %21 = dma.hbm_to_vmem [thread:$0]  %s767_s0, 4096, %s16_s13, [#allocation3], %s633_s22, %s633_s22, %s634_s23  }
  0x12   :  { %628 = dma.done.wait [#allocation3], 4096  }
  0x13   :  { %629 = vsyncadd [#allocation3], 4294963200  ;;  %vm72_vm0 = vcmask 261120   ;;  %v61_v0 = vld [vmem:[%s768_s1] sm:$0xff]  ;;  %v62_v1 = vld [vmem:[%s768_s1 + $0x8] sm:$0xff] }
  0x14   :  { %v63_v2 = vld [vmem:[%s768_s1 + $0x10] sm:$0xff]  ;;  %v568_v3 = vpack.c.bf16 %v62_v1, %v61_v0  ;;  %v64_v4 = vld [vmem:[%s768_s1 + $0x18] sm:$0xff]  ;;  %v29_v5 = vld [vmem:[#allocation2] sm:$0xff] }
  0x15   :  { %v45_v6 = vld [vmem:[#allocation2 + $0x80] sm:$0xff]  ;;  %v572_v7 = vpack.c.bf16 %v64_v4, %v63_v2  ;;  %520 = vmatprep.mubr.msk.f32.mxu0 %vm72_vm0, %v29_v5  ;;  %v30_v8 = vld [vmem:[#allocation2 + $0x8] sm:$0xff]  ;;  %v31_v10 = vld [vmem:[#allocation2 + $0x10] sm:$0xff] }
  0x16   :  { %544 = vmatprep.mubr.msk.f32.mxu1 %vm72_vm0, %v45_v6  ;;  %569 = vmatprep.subr.bf16.mxu0 %v568_v3  ;;  %v46_v9 = vld [vmem:[#allocation2 + $0x88] sm:$0xff]  ;;  %v47_v11 = vld [vmem:[#allocation2 + $0x90] sm:$0xff]  ;;  %v32_v12 = vld [vmem:[#allocation2 + $0x18] sm:$0xff] }
  0x17   :  { %576 = vmatprep.subr.bf16.mxu1 %v568_v3  ;;  %571 = vmatpush3.bf16.msra.mxu0 %v568_v3  ;;  %v48_v13 = vld [vmem:[#allocation2 + $0x98] sm:$0xff]  ;;  %v33_v14 = vld [vmem:[#allocation2 + $0x20] sm:$0xff]  ;;  %v34_v16 = vld [vmem:[#allocation2 + $0x28] sm:$0xff] }
  0x18   :  { %578 = vmatpush3.bf16.msra.mxu1 %v568_v3  ;;  %573 = vmatprep.subr.bf16.mxu0 %v572_v7  ;;  %v49_v15 = vld [vmem:[#allocation2 + $0xa0] sm:$0xff]  ;;  %v50_v17 = vld [vmem:[#allocation2 + $0xa8] sm:$0xff]  ;;  %v35_v18 = vld [vmem:[#allocation2 + $0x30] sm:$0xff] }
  0x19   :  { %577 = vmatprep.subr.bf16.mxu1 %v572_v7  ;;  %v51_v19 = vld [vmem:[#allocation2 + $0xb0] sm:$0xff]  ;;  %v36_v20 = vld [vmem:[#allocation2 + $0x38] sm:$0xff]  ;;  %v37_v22 = vld [vmem:[#allocation2 + $0x40] sm:$0xff] }
  0x1a   :  { %v52_v21 = vld [vmem:[#allocation2 + $0xb8] sm:$0xff]  ;;  %v53_v23 = vld [vmem:[#allocation2 + $0xc0] sm:$0xff]  ;;  %v38_v24 = vld [vmem:[#allocation2 + $0x48] sm:$0xff] }
  0x1b   :  { %575 = vmatpush3.bf16.msra.mxu0 %v572_v7  ;;  %v54_v25 = vld [vmem:[#allocation2 + $0xc8] sm:$0xff]  ;;  %v39_v26 = vld [vmem:[#allocation2 + $0x50] sm:$0xff]  ;;  %v40_v28 = vld [vmem:[#allocation2 + $0x58] sm:$0xff] }
  0x1c   :  { %579 = vmatpush3.bf16.msra.mxu1 %v572_v7  ;;  %v55_v27 = vld [vmem:[#allocation2 + $0xd0] sm:$0xff]  ;;  %v56_v29 = vld [vmem:[#allocation2 + $0xd8] sm:$0xff]  ;;  %v41_v30 = vld [vmem:[#allocation2 + $0x60] sm:$0xff] }
  0x1d   :  { %v57_v31 = vld [vmem:[#allocation2 + $0xe0] sm:$0xff]  ;;  %v42_v32 = vld [vmem:[#allocation2 + $0x68] sm:$0xff]  ;;  %v43_v34 = vld [vmem:[#allocation2 + $0x70] sm:$0xff] }
  0x1e   :  { %521 = vmatmul.mubr.msk.f32.vlgmr.msra.gmra.mrb[0].mxu0 %vm72_vm0, %v30_v8  ;;  %v58_v33 = vld [vmem:[#allocation2 + $0xe8] sm:$0xff]  ;;  %v59_v35 = vld [vmem:[#allocation2 + $0xf0] sm:$0xff]  ;;  %v44_v36 = vld [vmem:[#allocation2 + $0x78] sm:$0xff] }
  0x1f   :  { %545 = vmatmul.mubr.msk.f32.vlgmr.msra.gmra.mrb[0].mxu1 %vm72_vm0, %v46_v9  ;;  %523 = vmatprep.mubr.msk.f32.mxu0 %vm72_vm0, %v31_v10  ;;  %v60_v37 = vld [vmem:[#allocation2 + $0xf8] sm:$0xff]  ;;  %v718_v38 = vld [vmem:[%s769_s2] ss:$0 sm:$0xff]  ;;  %s635_s2 = smov [#allocation5]  }
  0x20   :  { %547 = vmatprep.mubr.msk.f32.mxu1 %vm72_vm0, %v47_v11  ;;  %s431_s7 = sshll.u32 %s635_s2, 4  ;;  %s432_s7 = int_to_ptr.vmem [resolvable:$true] %s431_s7 }
  0x21   :  { %s606_s8 = scalar_lea.vmem %s432_s7, 4096  ;;  %p611_p9 = scmp.lt.s32.totalorder %s432_s7, %s432_s7 }
  0x22   :  { %524 = vmatmul.mubr.msk.f32.gmra.mrb[2].mxu0 %vm72_vm0, %v32_v12  ;;  %p607_p8 = scmp.ne.s32.totalorder %s432_s7, %s606_s8  ;;  %p612_p10 = scmp.lt.s32.totalorder %s606_s8, %s606_s8 }
  0x23   :  { %548 = vmatmul.mubr.msk.f32.gmra.mrb[2].mxu1 %vm72_vm0, %v48_v13  ;;  %526 = vmatprep.mubr.msk.f32.mxu0 %vm72_vm0, %v33_v14 }
  0x24   :  { %550 = vmatprep.mubr.msk.f32.mxu1 %vm72_vm0, %v49_v15  ;;  %p613_p11 = por %p612_p10, %p611_p9 }
  0x26   :  { %527 = vmatmul.mubr.msk.f32.gmra.mrb[4].mxu0 %vm72_vm0, %v34_v16  ;;  %p614_p12 = pnand %p613_p11, %p607_p8 }
  0x27   :  { %551 = vmatmul.mubr.msk.f32.gmra.mrb[4].mxu1 %vm72_vm0, %v50_v17  ;;  %529 = vmatprep.mubr.msk.f32.mxu0 %vm72_vm0, %v35_v18 }
  0x28   :  { %553 = vmatprep.mubr.msk.f32.mxu1 %vm72_vm0, %v51_v19 }
  0x2a   :  { %530 = vmatmul.mubr.msk.f32.gmra.mrb[6].mxu0 %vm72_vm0, %v36_v20 }
  0x2b   :  { %554 = vmatmul.mubr.msk.f32.gmra.mrb[6].mxu1 %vm72_vm0, %v52_v21  ;;  %532 = vmatprep.mubr.msk.f32.mxu0 %vm72_vm0, %v37_v22 }
  0x2c   :  { %556 = vmatprep.mubr.msk.f32.mxu1 %vm72_vm0, %v53_v23 }
  0x2e   :  { %533 = vmatmul.mubr.msk.f32.gmra.mrb[8].mxu0 %vm72_vm0, %v38_v24 }
  0x2f   :  { %557 = vmatmul.mubr.msk.f32.gmra.mrb[8].mxu1 %vm72_vm0, %v54_v25  ;;  %535 = vmatprep.mubr.msk.f32.mxu0 %vm72_vm0, %v39_v26 }
  0x30   :  { %559 = vmatprep.mubr.msk.f32.mxu1 %vm72_vm0, %v55_v27 }
  0x32   :  { %536 = vmatmul.mubr.msk.f32.gmra.mrb[10].mxu0 %vm72_vm0, %v40_v28 }
  0x33   :  { %560 = vmatmul.mubr.msk.f32.gmra.mrb[10].mxu1 %vm72_vm0, %v56_v29  ;;  %538 = vmatprep.mubr.msk.f32.mxu0 %vm72_vm0, %v41_v30 }
  0x34   :  { %562 = vmatprep.mubr.msk.f32.mxu1 %vm72_vm0, %v57_v31 }
  0x36   :  { %539 = vmatmul.mubr.msk.f32.gmra.mrb[12].mxu0 %vm72_vm0, %v42_v32 }
  0x37   :  { %563 = vmatmul.mubr.msk.f32.gmra.mrb[12].mxu1 %vm72_vm0, %v58_v33  ;;  %541 = vmatprep.mubr.msk.f32.mxu0 %vm72_vm0, %v43_v34 }
  0x38   :  { %565 = vmatprep.mubr.msk.f32.mxu1 %vm72_vm0, %v59_v35 }
  0x3a   :  { %542 = vmatmul.mubr.msk.f32.gmra.mrb[14].mxu0 %vm72_vm0, %v44_v36 }
  0x3b   :  { %566 = vmatmul.mubr.msk.f32.gmra.mrb[14].mxu1 %vm72_vm0, %v60_v37 }
  0xf1   :  { %v522_v39 = vpop.f32.mrb[0].mxu0 }
  0xf2   :  { %v546_v40 = vpop.f32.mrb[0].mxu1  ;;  %v241_v41 = vadd.f32 %v522_v39, %v718_v38  ;;  %v235_v43 = vpop.f32.mrb[1].mxu0 }
  0xf3   :  { %v321_v42 = vadd.f32 %v546_v40, %v718_v38  ;;  %v315_v44 = vpop.f32.mrb[1].mxu1  ;;  %v236_v45 = vadd.f32 %v718_v38, %v235_v43 }
  0xf4   :  { %v316_v46 = vadd.f32 %v718_v38, %v315_v44  ;;  %395 = vst [vmem:[#allocation5 + $0x8] sm:$0xff] %v241_v41 }
  0xf5   :  { %411 = vst [vmem:[#allocation5 + $0x88] sm:$0xff] %v321_v42  ;;  %394 = vst [vmem:[#allocation5] sm:$0xff] %v236_v45  ;;  %v525_v47 = vpop.f32.mrb[2].mxu0 }
  0xf6   :  { %410 = vst [vmem:[#allocation5 + $0x80] sm:$0xff] %v316_v46  ;;  %v549_v48 = vpop.f32.mrb[2].mxu1  ;;  %v251_v49 = vadd.f32 %v525_v47, %v718_v38  ;;  %v245_v51 = vpop.f32.mrb[3].mxu0 }
  0xf7   :  { %v331_v50 = vadd.f32 %v549_v48, %v718_v38  ;;  %v325_v52 = vpop.f32.mrb[3].mxu1  ;;  %v246_v53 = vadd.f32 %v718_v38, %v245_v51 }
  0xf8   :  { %v326_v54 = vadd.f32 %v718_v38, %v325_v52  ;;  %397 = vst [vmem:[#allocation5 + $0x18] sm:$0xff] %v251_v49 }
  0xf9   :  { %413 = vst [vmem:[#allocation5 + $0x98] sm:$0xff] %v331_v50  ;;  %396 = vst [vmem:[#allocation5 + $0x10] sm:$0xff] %v246_v53  ;;  %v528_v55 = vpop.f32.mrb[4].mxu0 }
  0xfa   :  { %412 = vst [vmem:[#allocation5 + $0x90] sm:$0xff] %v326_v54  ;;  %v552_v56 = vpop.f32.mrb[4].mxu1  ;;  %v261_v57 = vadd.f32 %v528_v55, %v718_v38  ;;  %v255_v59 = vpop.f32.mrb[5].mxu0 }
  0xfb   :  { %v341_v58 = vadd.f32 %v552_v56, %v718_v38  ;;  %v335_v60 = vpop.f32.mrb[5].mxu1  ;;  %v256_v61 = vadd.f32 %v718_v38, %v255_v59 }
  0xfc   :  { %v336_v62 = vadd.f32 %v718_v38, %v335_v60  ;;  %399 = vst [vmem:[#allocation5 + $0x28] sm:$0xff] %v261_v57 }
  0xfd   :  { %415 = vst [vmem:[#allocation5 + $0xa8] sm:$0xff] %v341_v58  ;;  %398 = vst [vmem:[#allocation5 + $0x20] sm:$0xff] %v256_v61  ;;  %v531_v63 = vpop.f32.mrb[6].mxu0 }
  0xfe   :  { %414 = vst [vmem:[#allocation5 + $0xa0] sm:$0xff] %v336_v62  ;;  %v555_v0 = vpop.f32.mrb[6].mxu1  ;;  %v271_v1 = vadd.f32 %v531_v63, %v718_v38  ;;  %v265_v3 = vpop.f32.mrb[7].mxu0 }
  0xff   :  { %v351_v2 = vadd.f32 %v555_v0, %v718_v38  ;;  %v345_v4 = vpop.f32.mrb[7].mxu1  ;;  %v266_v5 = vadd.f32 %v718_v38, %v265_v3 }
 0x100   :  { %v346_v6 = vadd.f32 %v718_v38, %v345_v4  ;;  %401 = vst [vmem:[#allocation5 + $0x38] sm:$0xff] %v271_v1 }
 0x101   :  { %417 = vst [vmem:[#allocation5 + $0xb8] sm:$0xff] %v351_v2  ;;  %400 = vst [vmem:[#allocation5 + $0x30] sm:$0xff] %v266_v5  ;;  %v534_v7 = vpop.f32.mrb[8].mxu0 }
 0x102   :  { %416 = vst [vmem:[#allocation5 + $0xb0] sm:$0xff] %v346_v6  ;;  %v558_v8 = vpop.f32.mrb[8].mxu1  ;;  %v281_v9 = vadd.f32 %v534_v7, %v718_v38  ;;  %v275_v11 = vpop.f32.mrb[9].mxu0 }
 0x103   :  { %v361_v10 = vadd.f32 %v558_v8, %v718_v38  ;;  %v355_v12 = vpop.f32.mrb[9].mxu1  ;;  %v276_v13 = vadd.f32 %v718_v38, %v275_v11 }
 0x104   :  { %v356_v14 = vadd.f32 %v718_v38, %v355_v12  ;;  %403 = vst [vmem:[#allocation5 + $0x48] sm:$0xff] %v281_v9 }
 0x105   :  { %419 = vst [vmem:[#allocation5 + $0xc8] sm:$0xff] %v361_v10  ;;  %402 = vst [vmem:[#allocation5 + $0x40] sm:$0xff] %v276_v13  ;;  %v537_v15 = vpop.f32.mrb[10].mxu0 }
 0x106   :  { %418 = vst [vmem:[#allocation5 + $0xc0] sm:$0xff] %v356_v14  ;;  %v561_v16 = vpop.f32.mrb[10].mxu1  ;;  %v291_v17 = vadd.f32 %v537_v15, %v718_v38  ;;  %v285_v19 = vpop.f32.mrb[11].mxu0 }
 0x107   :  { %v371_v18 = vadd.f32 %v561_v16, %v718_v38  ;;  %v365_v20 = vpop.f32.mrb[11].mxu1  ;;  %v286_v21 = vadd.f32 %v718_v38, %v285_v19 }
 0x108   :  { %v366_v22 = vadd.f32 %v718_v38, %v365_v20  ;;  %405 = vst [vmem:[#allocation5 + $0x58] sm:$0xff] %v291_v17 }
 0x109   :  { %421 = vst [vmem:[#allocation5 + $0xd8] sm:$0xff] %v371_v18  ;;  %404 = vst [vmem:[#allocation5 + $0x50] sm:$0xff] %v286_v21  ;;  %v540_v23 = vpop.f32.mrb[12].mxu0 }
 0x10a   :  { %420 = vst [vmem:[#allocation5 + $0xd0] sm:$0xff] %v366_v22  ;;  %v564_v24 = vpop.f32.mrb[12].mxu1  ;;  %v301_v25 = vadd.f32 %v540_v23, %v718_v38  ;;  %v295_v27 = vpop.f32.mrb[13].mxu0 }
 0x10b   :  { %v381_v26 = vadd.f32 %v564_v24, %v718_v38  ;;  %v375_v28 = vpop.f32.mrb[13].mxu1  ;;  %v296_v29 = vadd.f32 %v718_v38, %v295_v27 }
 0x10c   :  { %v376_v30 = vadd.f32 %v718_v38, %v375_v28  ;;  %407 = vst [vmem:[#allocation5 + $0x68] sm:$0xff] %v301_v25 }
 0x10d   :  { %423 = vst [vmem:[#allocation5 + $0xe8] sm:$0xff] %v381_v26  ;;  %406 = vst [vmem:[#allocation5 + $0x60] sm:$0xff] %v296_v29  ;;  %v543_v31 = vpop.f32.mrb[14].mxu0 }
 0x10e   :  { %422 = vst [vmem:[#allocation5 + $0xe0] sm:$0xff] %v376_v30  ;;  %v567_v32 = vpop.f32.mrb[14].mxu1  ;;  %v311_v33 = vadd.f32 %v543_v31, %v718_v38  ;;  %v305_v35 = vpop.f32.mrb[15].mxu0 }
 0x10f   :  { %v391_v34 = vadd.f32 %v567_v32, %v718_v38  ;;  %v385_v36 = vpop.f32.mrb[15].mxu1  ;;  %v306_v37 = vadd.f32 %v718_v38, %v305_v35 }
 0x110   :  { %v386_v39 = vadd.f32 %v718_v38, %v385_v36  ;;  %409 = vst [vmem:[#allocation5 + $0x78] sm:$0xff] %v311_v33 }
 0x111   :  { %425 = vst [vmem:[#allocation5 + $0xf8] sm:$0xff] %v391_v34  ;;  %408 = vst [vmem:[#allocation5 + $0x70] sm:$0xff] %v306_v37 }
 0x112   :  { %424 = vst [vmem:[#allocation5 + $0xf0] sm:$0xff] %v386_v39 }
 0x113   :  { %617 = shalt.err (!%p614_p12)
}
 0x114   :  { %s618_s11 = scalar_lea.hbm %s770_s3, 4096 }
 0x115   :  { %p619_p13 = scmp.ne.s32.totalorder %s770_s3, %s618_s11  ;;  %p622_p0 = scmp.lt.u32.totalorder %s618_s11, %s770_s3 }
 0x117   :  { %p624_p1 = pnand %p622_p0, %p619_p13 }
 0x119   :  { %627 = shalt.err (!%p624_p1)
}
 0x11a   :  { %437 = dma.vmem_to_hbm [thread:$0]  %s432_s7, 4096, %s770_s3, [#allocation4], %s633_s22, %s633_s22, %s634_s23  }
 0x11b   :  { %630 = dma.done.wait [#allocation4], 4096  }
 0x11c   :  { %631 = vsyncadd [#allocation4], 4294963200 }
 0x11d   :  { %441 = vsyncpa [#allocation3], 1 }
 0x11e   :  { %442 = vsyncpa [#allocation4], 1 }

</bundles_post_ra>
